<compile_context>
chip_gen: v6e
topology: v6e:2x2x1
jax: 0.10.0
libtpu: 0.0.40
codegen_flags: <defaults>
</compile_context>

<pallas_src>
import jax
import jax.numpy as jnp
from jax.experimental import pallas as pl
from jax.experimental.pallas import tpu as pltpu

_LANE = 128
_SUBLANE = 8
_MAX_TILE_ROWS = 2048           # 2048 rows x 128 lanes x 4 B = 1 MiB per plane per grid step
_PALLAS_MIN_POINTS = 1 << 15    # below this a fused jnp expression beats any kernel launch


def _round_up(n, m):
    return ((n + m - 1) // m) * m


def _hidden_unit_kernel(params_ref, x_ref, o_ref):
    # params_ref: SMEM (3,) scalars [slope0, slope1, offset] (scalar prefetch).
    # x_ref:      VMEM (2, tile_rows, 128) — two feature-major, (8,128)-dense planes.
    # o_ref:      VMEM (tile_rows, 128)    — lane/sublane-dense, unmasked stores.
    s0 = params_ref[0]
    s1 = params_ref[1]
    off = params_ref[2]
    val = x_ref[0] * s0 + x_ref[1] * s1 + off      # pure VPU multiply-adds on full vregs
    o_ref[...] = jnp.maximum(val, 0.0)             # ReLU


def hidden_unit_ref(x, slopes, offset):
    """Pure-JAX reference mirroring the PyTorch forward (also the small-batch path)."""
    value = jnp.sum(slopes * x, axis=-1) + offset
    return jnp.maximum(value, 0.0)


def hidden_unit_forward(x, slopes, offset, *, prefer_pallas=None):
    """Pallas implementation of HiddenUnit.forward.

    x: (2,) single point or (B, 2) batch. slopes: (2,), offset: (1,).
    Returns shape (1,) for a single point, (B,) for a batch (matches PyTorch
    broadcasting of the (1,)-shaped offset).

    prefer_pallas: None -> auto (Pallas only for large B); True/False -> force.
    """
    single = (x.ndim == 1)
    if single:
        assert x.shape[0] == 2, f"single data-point must have dim 2, got {x.shape}"
        xb = x.reshape(1, 2)
    elif x.ndim == 2:
        assert x.shape[1] == 2, f"each data-point must have dim 2, got {x.shape}"
        xb = x
    else:
        raise ValueError(f"unexpected input shape: {x.shape}")

    B = xb.shape[0]
    slopes = jnp.asarray(slopes, jnp.float32).reshape(2)
    offset = jnp.asarray(offset, jnp.float32).reshape(1)

    use_pallas = prefer_pallas if prefer_pallas is not None else (B >= _PALLAS_MIN_POINTS)
    if not use_pallas:
        out = hidden_unit_ref(jnp.asarray(xb, jnp.float32), slopes, offset)
        return out if not single else out[:1]

    # (8,128)-dense feature-major layout: (B, 2) -> (2, rows, 128).  Pad only to
    # a (sublane x lane) multiple (<= 1023 extra elements), never to a block multiple.
    b_pad = _round_up(B, _SUBLANE * _LANE)
    rows = b_pad // _LANE
    # TODO(synk): accept feature-major (2, B) input to eliminate this transpose pass.
    xt = jnp.asarray(xb, jnp.float32).T                       # (2, B)
    xt = jnp.pad(xt, ((0, 0), (0, b_pad - B)))                # (2, b_pad)
    x3 = xt.reshape(2, rows, _LANE)                           # (2, rows, 128)

    # Pack scalar parameters for SMEM scalar prefetch.
    params = jnp.concatenate([slopes, offset])                # (3,)

    # Tile rows: ~MiB-scale steps to amortize per-step overhead, but keep the
    # grid length >= 2 when rows allow so v7x shards it over its 2 TensorCores.
    half_rows = _round_up((rows + 1) // 2, _SUBLANE)
    tile_rows = max(_SUBLANE, min(_MAX_TILE_ROWS, half_rows))
    num_blocks = pl.cdiv(rows, tile_rows)

    out = pl.pallas_call(
        _hidden_unit_kernel,
        out_shape=jax.ShapeDtypeStruct((rows, _LANE), jnp.float32),
        grid_spec=pltpu.PrefetchScalarGridSpec(
            num_scalar_prefetch=1,                            # params -> SMEM
            grid=(num_blocks,),
            in_specs=[
                pl.BlockSpec((2, tile_rows, _LANE), lambda i, p_ref: (0, i, 0)),
            ],
            out_specs=pl.BlockSpec((tile_rows, _LANE), lambda i, p_ref: (i, 0)),
        ),
        compiler_params=pltpu.CompilerParams(
            dimension_semantics=("parallel",),                # batch axis shardable across TCs
        ),
    )(params, x3)

    out = out.reshape(b_pad)[:B]                              # drop lane padding
    return out if not single else out[:1]


if __name__ == "__main__":
    key = jax.random.PRNGKey(0)
    k_s, k_o, k_x = jax.random.split(key, 3)

    # Deterministic parameter init mimicking torch.rand (uniform [0, 1)).
    slopes = jax.random.uniform(k_s, (2,), dtype=jnp.float32)
    offset = jax.random.uniform(k_o, (1,), dtype=jnp.float32)

    # Small batch of 8 two-dimensional points; force the Pallas path so the
    # kernel itself is exercised (auto-dispatch would use the fused jnp path).
    x = jax.random.normal(k_x, (8, 2), dtype=jnp.float32)
    out = jax.block_until_ready(hidden_unit_forward(x, slopes, offset, prefer_pallas=True))
    ref = hidden_unit_ref(x, slopes, offset)
    assert out.shape == (8,), out.shape
    assert jnp.allclose(out, ref, atol=1e-6, rtol=1e-6), (out, ref)

    # Single data-point path (returns shape (1,) like the PyTorch module).
    out1 = jax.block_until_ready(hidden_unit_forward(x[0], slopes, offset, prefer_pallas=True))
    ref1 = hidden_unit_ref(x[0], slopes, offset)
    assert out1.shape == (1,), out1.shape
    assert jnp.allclose(out1, ref1, atol=1e-6, rtol=1e-6), (out1, ref1)

    # Batch exercising a multi-block grid with a ragged final block
    # (3000 points -> 24 rows of 128 lanes, tile_rows=16, grid=2).
    xL = jax.random.normal(jax.random.PRNGKey(1), (3000, 2), dtype=jnp.float32)
    outL = jax.block_until_ready(hidden_unit_forward(xL, slopes, offset, prefer_pallas=True))
    refL = hidden_unit_ref(xL, slopes, offset)
    assert outL.shape == (3000,), outL.shape
    assert jnp.allclose(outL, refL, atol=1e-5, rtol=1e-5)

    # Auto-dispatch path (small batch -> fused jnp expression, no kernel launch).
    outA = jax.block_until_ready(hidden_unit_forward(x, slopes, offset))
    assert jnp.allclose(outA, ref, atol=1e-6, rtol=1e-6)

    print("KERNEL_OK")
</pallas_src>

<mosaic_0001>
module attributes {stable_mosaic.version = 11 : i64} {
  func.func @_hidden_unit_kernel(%arg0: i32, %arg1: memref<3xf32, #tpu.memory_space<smem>>, %arg2: memref<2x8x128xf32, #tpu.memory_space<vmem>>, %arg3: memref<8x128xf32, #tpu.memory_space<vmem>>) attributes {dimension_semantics = [#tpu.dimension_semantics<parallel>], iteration_bounds = array<i64: 1>, scalar_prefetch = 1 : i64, scratch_operands = 0 : i64, tpu.core_type = #tpu.core_type<tc>, window_params = [{transform_indices = @transform_0, window_bounds = array<i64: 2, 8, 128>}, {transform_indices = @transform_1, window_bounds = array<i64: 8, 128>}]} {
    %c0 = arith.constant 0 : index
    %0 = memref.load %arg1[%c0] : memref<3xf32, #tpu.memory_space<smem>>
    %c1 = arith.constant 1 : index
    %1 = memref.load %arg1[%c1] : memref<3xf32, #tpu.memory_space<smem>>
    %c2 = arith.constant 2 : index
    %2 = memref.load %arg1[%c2] : memref<3xf32, #tpu.memory_space<smem>>
    %c0_0 = arith.constant 0 : index
    %c0_1 = arith.constant 0 : index
    %c0_2 = arith.constant 0 : index
    %3 = vector.load %arg2[%c0_0, %c0_1, %c0_2] : memref<2x8x128xf32, #tpu.memory_space<vmem>>, vector<1x8x128xf32>
    %4 = vector.shape_cast %3 : vector<1x8x128xf32> to vector<8x128xf32>
    %5 = vector.broadcast %0 : f32 to vector<8x128xf32>
    %6 = arith.mulf %4, %5 : vector<8x128xf32>
    %c1_3 = arith.constant 1 : index
    %c0_4 = arith.constant 0 : index
    %c0_5 = arith.constant 0 : index
    %7 = vector.load %arg2[%c1_3, %c0_4, %c0_5] : memref<2x8x128xf32, #tpu.memory_space<vmem>>, vector<1x8x128xf32>
    %8 = vector.shape_cast %7 : vector<1x8x128xf32> to vector<8x128xf32>
    %9 = vector.broadcast %1 : f32 to vector<8x128xf32>
    %10 = arith.mulf %8, %9 : vector<8x128xf32>
    %11 = arith.addf %6, %10 : vector<8x128xf32>
    %12 = vector.broadcast %2 : f32 to vector<8x128xf32>
    %13 = arith.addf %11, %12 : vector<8x128xf32>
    %cst = arith.constant 0.000000e+00 : f32
    %14 = vector.broadcast %cst : f32 to vector<8x128xf32>
    %15 = arith.maximumf %13, %14 : vector<8x128xf32>
    %c0_6 = arith.constant 0 : index
    %c0_7 = arith.constant 0 : index
    %16 = vector.load %arg3[%c0_6, %c0_7] : memref<8x128xf32, #tpu.memory_space<vmem>>, vector<8x128xf32>
    tpu.vector_store %arg3[%c0_6, %c0_7], %15 {strides = array<i32>} : memref<8x128xf32, #tpu.memory_space<vmem>>, vector<8x128xf32>,
    return
  }
  func.func @transform_0(%arg0: i32, %arg1: memref<3xf32, #tpu.memory_space<smem>>) -> (i32, i32, i32) {
    %c0_i32 = arith.constant 0 : i32
    %c0_i32_0 = arith.constant 0 : i32
    %c0_i32_1 = arith.constant 0 : i32
    return %c0_i32, %arg0, %c0_i32_0 : i32, i32, i32
  }
  func.func @transform_1(%arg0: i32, %arg1: memref<3xf32, #tpu.memory_space<smem>>) -> (i32, i32) {
    %c0_i32 = arith.constant 0 : i32
    %c0_i32_0 = arith.constant 0 : i32
    return %arg0, %c0_i32 : i32, i32
  }
}

</mosaic_0001>

<bundles_post_ra>
// kernel: tpu_custom_call.1
= control target key start
LH: loop header
LB: loop body
LE: loop exit
PB: predicated region body
PF: predicated region fallthrough
CT: control target
= control target key end

     0   :  { %s119_s9 = smov [#allocation3]   ;;  %s148_s0 = inlined_call_operand.hbm [shape: f32[3], index: 0, kind: input, shape index: {}]   ;;  %s149_s1 = inlined_call_operand.hbm [shape: f32[2,8,128], index: 1, kind: input, shape index: {}]   ;;  %s150_s2 = inlined_call_operand.hbm [shape: f32[8,128], index: 2, kind: output, shape index: {}]  }
   0x1   :  { %8 = dma.hbm_to_smem %s148_s0, 16, %s119_s9, [#allocation2] }
   0x2   :  { %113 = dma.done.wait [#allocation2], 16 }
   0x3   :  { %114 = vsyncadd [#allocation2], 4294967280 }
   0x4   :  { %10 = sfence }
   0x5   :  { %11 = vsyncpa [#allocation5], 0 }
   0x6   :  { %12 = vsyncpa [#allocation6], 0  ;;  %s120_s12 = smov [#allocation4]  }
   0x7   :  { %s18_s13 = sshll.u32 %s120_s12, 4  ;;  %s19_s13 = int_to_ptr.vmem [resolvable:$true] %s18_s13 }
   0x8   :  { %s81_s14 = scalar_lea.vmem %s19_s13, 256  ;;  %p86_p1 = scmp.lt.s32.totalorder %s19_s13, %s19_s13 }
   0x9   :  { %p82_p0 = scmp.ne.s32.totalorder %s19_s13, %s81_s14  ;;  %p87_p2 = scmp.lt.s32.totalorder %s81_s14, %s81_s14 }
   0xb   :  { %p88_p3 = por %p87_p2, %p86_p1 }
   0xd   :  { %p89_p4 = pnand %p88_p3, %p82_p0 }
   0xf   :  { %92 = shalt.err (!%p89_p4)
}
  0x10   :  { %s121_s15 = smov 128   ;;  %s122_s16 = smov 8  }
  0x11   :  { %24 = dma.hbm_to_vmem [thread:$0]  %s149_s1, 256, %s19_s13, [#allocation5], %s121_s15, %s121_s15, %s122_s16  }
  0x12   :  { %115 = dma.done.wait [#allocation5], 256  }
  0x13   :  { %116 = vsyncadd [#allocation5], 4294967040  ;;  %s28_s0 = sld [smem:[#allocation3]]  ;;  %v31_v0 = vld [vmem:[#allocation4] sm:$0xff]  ;;  %v35_v2 = vld [vmem:[#allocation4 + $0x8] sm:$0xff]  ;;  %s123_s21 = smov [#allocation7]  }
  0x14   :  { %s58_s19 = sld [smem:[#allocation3 + $0x1]]  ;;  %s49_s22 = sshll.u32 %s123_s21, 4  ;;  %s50_s22 = int_to_ptr.vmem [resolvable:$true] %s49_s22 }
  0x15   :  { %s59_s20 = sld [smem:[#allocation3 + $0x2]]  ;;  %s93_s1 = scalar_lea.vmem %s50_s22, 128 }
  0x16   :  { %p94_p5 = scmp.ne.s32.totalorder %s50_s22, %s93_s1  ;;  %p98_p6 = scmp.lt.s32.totalorder %s50_s22, %s50_s22 }
  0x17   :  { %p99_p7 = scmp.lt.s32.totalorder %s93_s1, %s93_s1 }
  0x19   :  { %v32_v1 = vstv %s28_s0  ;;  %p100_p8 = por %p99_p7, %p98_p6 }
  0x1a   :  { %v33_v3 = vmul.f32 %v32_v1, %v31_v0  ;;  %v36_v4 = vstv %s58_s19 }
  0x1b   :  { %v37_v5 = vmul.f32 %v36_v4, %v35_v2  ;;  %v39_v6 = vstv %s59_s20  ;;  %p101_p9 = pnand %p100_p8, %p94_p5 }
  0x1d   :  { %v38_v7 = vadd.f32 %v37_v5, %v33_v3 }
  0x1f   :  { %v40_v8 = vadd.f32 %v39_v6, %v38_v7 }
  0x21   :  { %v41_v9 = vmax.f32 %v40_v8, 0.0 }
  0x23   :  { %42 = vst [vmem:[#allocation7] sm:$0xff] %v41_v9 }
  0x24   :  { %104 = shalt.err (!%p101_p9)
}
  0x25   :  { %52 = dma.vmem_to_hbm [thread:$0]  %s50_s22, 128, %s150_s2, [#allocation6]  }
  0x26   :  { %117 = dma.done.wait [#allocation6], 128  }
  0x27   :  { %118 = vsyncadd [#allocation6], 4294967168 }
  0x28   :  { %56 = vsyncpa [#allocation5], 1 }
  0x29   :  { %57 = vsyncpa [#allocation6], 1 }

</bundles_post_ra>
